<compile_context>
chip_gen: v5e
topology: v5e:2x2
jax: 0.10.0
libtpu: 0.0.40
codegen_flags: <defaults>
</compile_context>

<pallas_src>
import functools

import numpy as np
import jax
import jax.numpy as jnp
from jax.experimental import pallas as pl
from jax.experimental.pallas import tpu as pltpu

LEAKY_SLOPE = 0.01  # F.leaky_relu default negative_slope


def _round_up(x, m):
    return (x + m - 1) // m * m


@functools.lru_cache(maxsize=1)
def _tensorcores_per_chip():
    """Best-effort TensorCore count (2 on v7x-class parts, else 1). Perf-only."""
    try:
        info = pltpu.get_tpu_info()
        for name in ("num_cores", "core_count", "num_tensorcores",
                     "tensorcore_count", "cores_per_chip", "num_cores_per_chip"):
            v = getattr(info, name, None)
            if isinstance(v, int) and v > 0:
                return v
    except Exception:
        pass
    return 1


def _task_decoder_kernel(x_ref,
                         w1_ref, b1_ref,
                         w2_ref, b2_ref,
                         wo_ref, bo_ref,
                         out_ref):
    """One batch-tile of the TaskDecoder MLP.

    x_ref : [bt, D]    natural layout (compute_dtype)
    w*_ref: [out, in]  PyTorch nn.Linear layout (compute_dtype)
    b*_ref: [out, 1]   f32, broadcast along the lane/batch axis
    out   : [O,  bt]   lane-dense
    """
    x = x_ref[...]

    # fc_layers[0] + leaky_relu.  Contract the feature axes of w1 and x directly
    # (== w1 @ x.T): the batch lands on the lane axis without any wrapper-side
    # transpose.  Accumulate + elementwise math in f32.
    h = jax.lax.dot_general(w1_ref[...], x,
                            dimension_numbers=(((1,), (1,)), ((), ())),
                            preferred_element_type=jnp.float32)
    h = h + b1_ref[...]
    h = jnp.where(h > 0, h, LEAKY_SLOPE * h)

    # fc_layers[1] + leaky_relu
    h = jnp.dot(w2_ref[...], h.astype(w2_ref.dtype),
                preferred_element_type=jnp.float32) + b2_ref[...]
    h = jnp.where(h > 0, h, LEAKY_SLOPE * h)

    # fc_out (no activation)
    out = jnp.dot(wo_ref[...], h.astype(wo_ref.dtype),
                  preferred_element_type=jnp.float32) + bo_ref[...]
    out_ref[...] = out.astype(out_ref.dtype)


def task_decoder_forward_ref(latent_state, params):
    """Pure-JAX reference matching the PyTorch forward (weights [out, in])."""
    h = latent_state.astype(jnp.float32)
    h = h @ params["w1"].T + params["b1"][:, 0]
    h = jnp.where(h > 0, h, LEAKY_SLOPE * h)
    h = h @ params["w2"].T + params["b2"][:, 0]
    h = jnp.where(h > 0, h, LEAKY_SLOPE * h)
    return h @ params["wo"].T + params["bo"][:, 0]


@functools.partial(jax.jit,
                   static_argnames=("batch_tile", "compute_dtype",
                                    "min_pallas_batch"))
def task_decoder_forward(latent_state, params, *,
                         batch_tile=2048,
                         compute_dtype=jnp.bfloat16,
                         min_pallas_batch=128):
    """TaskDecoder.forward via Pallas.

    latent_state: [B, latent_dim]
    params: dict of PyTorch-layout tensors
        w1 [H1, D], b1 [H1, 1], w2 [H2, H1], b2 [H2, 1], wo [O, H2], bo [O, 1]
    """
    B, D = latent_state.shape
    H1 = params["w1"].shape[0]
    H2 = params["w2"].shape[0]
    O = params["wo"].shape[0]
    out_dtype = latent_state.dtype

    # Tiny batch: the whole net is a handful of vregs; XLA's fused HLO beats
    # pallas_call launch + DMA setup.
    if B < min_pallas_batch:
        return task_decoder_forward_ref(latent_state, params).astype(out_dtype)

    # 128-aligned batch tile (lane-dense stores / lowering safety), capped near B
    # so we never allocate a much-too-big block.
    bt = _round_up(max(128, min(batch_tile, B)), 128)

    # Only multi-TensorCore parts (v7x) benefit from splitting the grid: give
    # dimension_semantics=("parallel",) an even number of steps to shard.  On
    # v5e/v6e the grid is a serial loop, so keep it as few steps as possible.
    if _tensorcores_per_chip() > 1:
        while pl.cdiv(B, bt) % 2 != 0 and bt >= 256:
            new_bt = _round_up(bt // 2, 128)
            if new_bt >= bt:
                break
            bt = new_bt

    grid = (pl.cdiv(B, bt),)   # ragged last tile handled by Pallas block clamping

    # bf16 (default) halves the dominant HBM term; in a real model this cast
    # fuses into the producer of latent_state.
    x = latent_state.astype(compute_dtype)
    w1 = params["w1"].astype(compute_dtype)
    w2 = params["w2"].astype(compute_dtype)
    wo = params["wo"].astype(compute_dtype)
    b1 = params["b1"].astype(jnp.float32)
    b2 = params["b2"].astype(jnp.float32)
    bo = params["bo"].astype(jnp.float32)

    # Advisory cost hint so XLA schedules around this short kernel sensibly.
    itemsize = np.dtype(compute_dtype).itemsize
    out_itemsize = np.dtype(out_dtype).itemsize
    flops = 2 * B * (D * H1 + H1 * H2 + H2 * O)
    param_bytes = (D * H1 + H1 * H2 + H2 * O) * itemsize + (H1 + H2 + O) * 4
    bytes_accessed = B * D * itemsize + B * O * out_itemsize + param_bytes
    cost = pl.CostEstimate(flops=flops, transcendentals=0,
                           bytes_accessed=bytes_accessed)

    # Weights/biases are grid-invariant (constant index_map) -> no re-DMA per step.
    const_spec = lambda shape: pl.BlockSpec(shape, lambda i: (0, 0))

    out_t = pl.pallas_call(
        _task_decoder_kernel,
        out_shape=jax.ShapeDtypeStruct((O, B), out_dtype),
        grid_spec=pltpu.PrefetchScalarGridSpec(
            num_scalar_prefetch=0,
            grid=grid,
            in_specs=[
                # Natural-layout activation tile: last dim D == full extent, so
                # the block is a single contiguous HBM slab per step.
                pl.BlockSpec((bt, D), lambda i: (i, 0)),
                const_spec((H1, D)), const_spec((H1, 1)),
                const_spec((H2, H1)), const_spec((H2, 1)),
                const_spec((O, H2)), const_spec((O, 1)),
            ],
            out_specs=pl.BlockSpec((O, bt), lambda i: (0, i)),
        ),
        compiler_params=pltpu.CompilerParams(
            dimension_semantics=("parallel",)),
        cost_estimate=cost,
    )(x, w1, b1, w2, b2, wo, bo)

    # Tiny [O, B] -> [B, O] relayout (O = 8).  Second-order: could be folded into
    # the kernel with an in-kernel transpose of the [O, bt] tile if profiling
    # shows this XLA op matters (review item 6).
    return out_t.T


def init_task_decoder_params(key, latent_dim, layers, output_dim,
                             dtype=jnp.float32):
    """Deterministic synthetic init matching the nn.Linear chain.

    Weights are [out_features, in_features] (PyTorch layout), biases [out, 1].
    """
    assert len(layers) == 2, "this script instantiates TaskDecoder with 2 hidden layers"
    k = jax.random.split(key, 6)
    dims = [latent_dim] + list(layers)
    params = {}
    for idx, (wn, bn) in enumerate([("w1", "b1"), ("w2", "b2")]):
        fan_in, fan_out = dims[idx], dims[idx + 1]
        scale = 1.0 / np.sqrt(fan_in)
        params[wn] = jax.random.uniform(k[2 * idx], (fan_out, fan_in),
                                        minval=-scale, maxval=scale).astype(dtype)
        params[bn] = jax.random.uniform(k[2 * idx + 1], (fan_out, 1),
                                        minval=-scale, maxval=scale).astype(dtype)
    fan_in = dims[-1]
    scale = 1.0 / np.sqrt(fan_in)
    params["wo"] = jax.random.uniform(k[4], (output_dim, fan_in),
                                      minval=-scale, maxval=scale).astype(dtype)
    params["bo"] = jax.random.uniform(k[5], (output_dim, 1),
                                      minval=-scale, maxval=scale).astype(dtype)
    return params


# TODO(synk): get_loss (MSE + optional time-weighted reduction) is a
# training-time helper, not part of forward(); it is not implemented here.

if __name__ == "__main__":
    # Module config: layers=[32, 32], latent_dim=32, pred_type='task_description',
    # task_dim=8 -> output_dim = task_dim = 8.
    latent_dim = 32
    layers = (32, 32)
    task_dim = 8

    key = jax.random.PRNGKey(0)
    k_params, k_x1, k_x2, k_x3 = jax.random.split(key, 4)
    params = init_task_decoder_params(k_params, latent_dim, layers, task_dim)

    # --- Pallas path, f32 compute, multi-step grid (bt=128, B=256): tight tol.
    x = jax.random.normal(k_x1, (256, latent_dim), dtype=jnp.float32)
    ref = task_decoder_forward_ref(x, params)
    out_f32 = jax.block_until_ready(
        task_decoder_forward(x, params, batch_tile=128, compute_dtype=jnp.float32))
    assert out_f32.shape == (256, task_dim), out_f32.shape
    assert jnp.allclose(out_f32, ref, atol=1e-4, rtol=1e-4), "f32 mismatch vs reference"

    # --- Default path: bf16 activation stream, single big tile (looser tol).
    out_def = jax.block_until_ready(task_decoder_forward(x, params))
    assert out_def.shape == (256, task_dim)
    assert jnp.allclose(out_def, ref, atol=1e-1, rtol=1e-1), "bf16 mismatch vs reference"

    # --- Ragged batch (B=300): exercises boundary-block clamping on the input
    #     row axis and the output lane axis (no wrapper-side padding anywhere).
    x_rag = jax.random.normal(k_x2, (300, latent_dim), dtype=jnp.float32)
    ref_rag = task_decoder_forward_ref(x_rag, params)
    out_rag = jax.block_until_ready(
        task_decoder_forward(x_rag, params, batch_tile=128, compute_dtype=jnp.float32))
    assert out_rag.shape == (300, task_dim), out_rag.shape
    assert jnp.allclose(out_rag, ref_rag, atol=1e-4, rtol=1e-4), "ragged-batch mismatch"

    # --- Tiny batch (the module's shipped config, B=8): pure-JAX fallback path.
    x_small = jax.random.normal(k_x3, (8, latent_dim), dtype=jnp.float32)
    out_small = jax.block_until_ready(task_decoder_forward(x_small, params))
    ref_small = task_decoder_forward_ref(x_small, params)
    assert out_small.shape == (8, task_dim)
    assert jnp.allclose(out_small, ref_small, atol=1e-5, rtol=1e-5), "fallback mismatch"

    print("KERNEL_OK")
</pallas_src>

<mosaic_0001>
module attributes {stable_mosaic.version = 11 : i64} {
  func.func @_task_decoder_kernel(%arg0: i32, %arg1: memref<128x32xf32, #tpu.memory_space<vmem>>, %arg2: memref<32x32xf32, #tpu.memory_space<vmem>>, %arg3: memref<32x1xf32, #tpu.memory_space<vmem>>, %arg4: memref<32x32xf32, #tpu.memory_space<vmem>>, %arg5: memref<32x1xf32, #tpu.memory_space<vmem>>, %arg6: memref<8x32xf32, #tpu.memory_space<vmem>>, %arg7: memref<8x1xf32, #tpu.memory_space<vmem>>, %arg8: memref<8x128xf32, #tpu.memory_space<vmem>>) attributes {dimension_semantics = [#tpu.dimension_semantics<parallel>], iteration_bounds = array<i64: 2>, scalar_prefetch = 0 : i64, scratch_operands = 0 : i64, tpu.core_type = #tpu.core_type<tc>, window_params = [{transform_indices = @transform_0, window_bounds = array<i64: 128, 32>}, {pipeline_mode = #tpu.pipeline_mode<synchronous>, transform_indices = @transform_1, window_bounds = array<i64: 32, 32>}, {pipeline_mode = #tpu.pipeline_mode<synchronous>, transform_indices = @transform_2, window_bounds = array<i64: 32, 1>}, {pipeline_mode = #tpu.pipeline_mode<synchronous>, transform_indices = @transform_3, window_bounds = array<i64: 32, 32>}, {pipeline_mode = #tpu.pipeline_mode<synchronous>, transform_indices = @transform_4, window_bounds = array<i64: 32, 1>}, {pipeline_mode = #tpu.pipeline_mode<synchronous>, transform_indices = @transform_5, window_bounds = array<i64: 8, 32>}, {pipeline_mode = #tpu.pipeline_mode<synchronous>, transform_indices = @transform_6, window_bounds = array<i64: 8, 1>}, {transform_indices = @transform_7, window_bounds = array<i64: 8, 128>}]} {
    %c0 = arith.constant 0 : index
    %c0_0 = arith.constant 0 : index
    %0 = vector.load %arg1[%c0, %c0_0] : memref<128x32xf32, #tpu.memory_space<vmem>>, vector<128x32xf32>
    %c0_1 = arith.constant 0 : index
    %c0_2 = arith.constant 0 : index
    %1 = vector.load %arg2[%c0_1, %c0_2] : memref<32x32xf32, #tpu.memory_space<vmem>>, vector<32x32xf32>
    %cst = arith.constant dense<0.000000e+00> : vector<32x128xf32>
    %2 = tpu.matmul %1, %0, %cst {dimension_numbers = #tpu.dot_dimension_numbers<[1], [1], [0], [0], [0, 0, 1, 0], [], []>} : vector<32x32xf32>, vector<128x32xf32>, vector<32x128xf32> -> vector<32x128xf32>
    %c0_3 = arith.constant 0 : index
    %c0_4 = arith.constant 0 : index
    %3 = vector.load %arg3[%c0_3, %c0_4] : memref<32x1xf32, #tpu.memory_space<vmem>>, vector<32x1xf32>
    %4 = vector.broadcast %3 : vector<32x1xf32> to vector<32x128xf32>
    %5 = arith.addf %2, %4 : vector<32x128xf32>
    %cst_5 = arith.constant 0.000000e+00 : f32
    %6 = vector.broadcast %cst_5 : f32 to vector<32x128xf32>
    %7 = arith.cmpf ogt, %5, %6 : vector<32x128xf32>
    %cst_6 = arith.constant 0.00999999977 : f32
    %8 = vector.broadcast %cst_6 : f32 to vector<32x128xf32>
    %9 = arith.mulf %8, %5 : vector<32x128xf32>
    %10 = arith.select %7, %5, %9 : vector<32x128xi1>, vector<32x128xf32>
    %c0_7 = arith.constant 0 : index
    %c0_8 = arith.constant 0 : index
    %11 = vector.load %arg4[%c0_7, %c0_8] : memref<32x32xf32, #tpu.memory_space<vmem>>, vector<32x32xf32>
    %cst_9 = arith.constant dense<0.000000e+00> : vector<32x128xf32>
    %12 = tpu.matmul %11, %10, %cst_9 {dimension_numbers = #tpu.dot_dimension_numbers<[1], [0], [0], [1], [0, 0, 1, 1], [], []>} : vector<32x32xf32>, vector<32x128xf32>, vector<32x128xf32> -> vector<32x128xf32>
    %c0_10 = arith.constant 0 : index
    %c0_11 = arith.constant 0 : index
    %13 = vector.load %arg5[%c0_10, %c0_11] : memref<32x1xf32, #tpu.memory_space<vmem>>, vector<32x1xf32>
    %14 = vector.broadcast %13 : vector<32x1xf32> to vector<32x128xf32>
    %15 = arith.addf %12, %14 : vector<32x128xf32>
    %cst_12 = arith.constant 0.000000e+00 : f32
    %16 = vector.broadcast %cst_12 : f32 to vector<32x128xf32>
    %17 = arith.cmpf ogt, %15, %16 : vector<32x128xf32>
    %cst_13 = arith.constant 0.00999999977 : f32
    %18 = vector.broadcast %cst_13 : f32 to vector<32x128xf32>
    %19 = arith.mulf %18, %15 : vector<32x128xf32>
    %20 = arith.select %17, %15, %19 : vector<32x128xi1>, vector<32x128xf32>
    %c0_14 = arith.constant 0 : index
    %c0_15 = arith.constant 0 : index
    %21 = vector.load %arg6[%c0_14, %c0_15] : memref<8x32xf32, #tpu.memory_space<vmem>>, vector<8x32xf32>
    %cst_16 = arith.constant dense<0.000000e+00> : vector<8x128xf32>
    %22 = tpu.matmul %21, %20, %cst_16 {dimension_numbers = #tpu.dot_dimension_numbers<[1], [0], [0], [1], [0, 0, 1, 1], [], []>} : vector<8x32xf32>, vector<32x128xf32>, vector<8x128xf32> -> vector<8x128xf32>
    %c0_17 = arith.constant 0 : index
    %c0_18 = arith.constant 0 : index
    %23 = vector.load %arg7[%c0_17, %c0_18] : memref<8x1xf32, #tpu.memory_space<vmem>>, vector<8x1xf32>
    %24 = vector.broadcast %23 : vector<8x1xf32> to vector<8x128xf32>
    %25 = arith.addf %22, %24 : vector<8x128xf32>
    %c0_19 = arith.constant 0 : index
    %c0_20 = arith.constant 0 : index
    %26 = vector.load %arg8[%c0_19, %c0_20] : memref<8x128xf32, #tpu.memory_space<vmem>>, vector<8x128xf32>
    tpu.vector_store %arg8[%c0_19, %c0_20], %25 {strides = array<i32>} : memref<8x128xf32, #tpu.memory_space<vmem>>, vector<8x128xf32>,
    return
  }
  func.func @transform_0(%arg0: i32) -> (i32, i32) {
    %c0_i32 = arith.constant 0 : i32
    %c0_i32_0 = arith.constant 0 : i32
    return %arg0, %c0_i32 : i32, i32
  }
  func.func @transform_1(%arg0: i32) -> (i32, i32) {
    %c0_i32 = arith.constant 0 : i32
    %c0_i32_0 = arith.constant 0 : i32
    %c0_i32_1 = arith.constant 0 : i32
    return %c0_i32, %c0_i32_0 : i32, i32
  }
  func.func @transform_2(%arg0: i32) -> (i32, i32) {
    %c0_i32 = arith.constant 0 : i32
    %c0_i32_0 = arith.constant 0 : i32
    %c0_i32_1 = arith.constant 0 : i32
    return %c0_i32, %c0_i32_0 : i32, i32
  }
  func.func @transform_3(%arg0: i32) -> (i32, i32) {
    %c0_i32 = arith.constant 0 : i32
    %c0_i32_0 = arith.constant 0 : i32
    %c0_i32_1 = arith.constant 0 : i32
    return %c0_i32, %c0_i32_0 : i32, i32
  }
  func.func @transform_4(%arg0: i32) -> (i32, i32) {
    %c0_i32 = arith.constant 0 : i32
    %c0_i32_0 = arith.constant 0 : i32
    %c0_i32_1 = arith.constant 0 : i32
    return %c0_i32, %c0_i32_0 : i32, i32
  }
  func.func @transform_5(%arg0: i32) -> (i32, i32) {
    %c0_i32 = arith.constant 0 : i32
    %c0_i32_0 = arith.constant 0 : i32
    %c0_i32_1 = arith.constant 0 : i32
    return %c0_i32, %c0_i32_0 : i32, i32
  }
  func.func @transform_6(%arg0: i32) -> (i32, i32) {
    %c0_i32 = arith.constant 0 : i32
    %c0_i32_0 = arith.constant 0 : i32
    %c0_i32_1 = arith.constant 0 : i32
    return %c0_i32, %c0_i32_0 : i32, i32
  }
  func.func @transform_7(%arg0: i32) -> (i32, i32) {
    %c0_i32 = arith.constant 0 : i32
    %c0_i32_0 = arith.constant 0 : i32
    return %c0_i32, %arg0 : i32, i32
  }
}

</mosaic_0001>

<bundles_post_ra>
// kernel: task_decoder_forward.1
= control target key start
LH: loop header
LB: loop body
LE: loop exit
PB: predicated region body
PF: predicated region fallthrough
CT: control target
= control target key end

     0   :  { %12 = vsyncpa [#allocation3], 0  ;;  %s1009_s0 = inlined_call_operand.vmem [shape: f32[256,32], index: 0, kind: input, shape index: {}]   ;;  %s1010_s1 = inlined_call_operand.vmem [shape: f32[32,32], index: 1, kind: input, shape index: {}]   ;;  %s1011_s2 = inlined_call_operand.vmem [shape: f32[32,1], index: 2, kind: input, shape index: {}]   ;;  %s1012_s3 = inlined_call_operand.vmem [shape: f32[32,32], index: 3, kind: input, shape index: {}]   ;;  %s1013_s4 = inlined_call_operand.vmem [shape: f32[32,1], index: 4, kind: input, shape index: {}]   ;;  %s1014_s5 = inlined_call_operand.vmem [shape: f32[8,32], index: 5, kind: input, shape index: {}]   ;;  %s1015_s6 = inlined_call_operand.vmem [shape: f32[8,1], index: 6, kind: input, shape index: {}]   ;;  %s1016_s7 = inlined_call_operand.hbm [shape: f32[8,256], index: 7, kind: output, shape index: {}]  }
   0x1   :  { %14 = vsyncpa [#allocation3 + $0x1], 0  ;;  %s812_s24 = smov 0   ;;  %s814_s25 = smov 0  }
   0x2   :  { %s816_s26 = smov 0   ;;  %s818_s27 = smov 0  }
   0x3 LB: > { %s833_s28 = sadd.s32 4294967295, %s769_s27   ;;  %s612_s29 = sadd.s32 4294967294, %s769_s27   ;;  %s769_s27 = sphi %s818_s27, %s1022_s27   ;;  %s765_s26 = sphi %s816_s26, %s1021_s26   ;;  %s761_s25 = sphi %s814_s25, %s1020_s25   ;;  %s757_s24 = sphi %s812_s24, %s1019_s24  }
   0x4   : > { %s837_s30 = sadd.s32 1, %s769_s27   ;;  %s179_s8 = sadd.s32 1, %s765_s26 }
   0x5   : > { %s176_s9 = ssub.s32 %s769_s27, %s837_s30  ;;  %p189_p0 = scmp.ne.s32.totalorder %s765_s26, %s761_s25 }
   0x6   : > { %p177_p1 = scmp.eq.s32.totalorder %s176_s9, 0  ;;  %p190_p2 = scmp.eq.s32.totalorder %s833_s28, 1 }
   0x7   : > { %p195_p3 = scmp.ne.s32.totalorder %s761_s25, %s757_s24  ;;  %p196_p4 = scmp.eq.s32.totalorder %s612_s29, 1 }
   0x8   : > { %s848_s10 = scalar_select %p177_p1, %s765_s26, %s179_s8  }
   0x9   : > { %p850_p5 = por %p190_p2, %p189_p0  ;;  %p854_p6 = por %p196_p4, %p195_p3 }
   0xa   : > { %p615_p7 = scmp.ge.s32.totalorder %s769_s27, 1  ;;  %p241_p8 = scmp.lt.s32.totalorder %s769_s27, 3 }
   0xc   : > { %p242_p9 = pnand %p615_p7, %p241_p8 }
   0xd   : > { %s617_s13 = sshll.u32 (!%p242_p9), %s833_s28, 4  ;;  %s270_s9 = sand.u32 (!%p242_p9), 1, %s761_s25  }
   0xe   : > { %245 = sbr.rel (%p242_p9) target bundleno = 545 (0x221), region = 48  ;;  %p274_p10 = scmp.lt.s32.totalorder (!%p242_p9), %s617_s13, 31 }
   0xf   : > { %s727_s8 = scalar_lea.hbm (!%p242_p9), %s1016_s7, 16 }
  0x13   : > { %s1024_s13 = smov (!%p274_p10, %s617_s13), 31  ;;  %vm323_vm0 = vcmask 261120   ;;  %v302_v11 = vld [vmem:[%s1011_s2 + $0x18] sm:$0xff]  ;;  %v300_v12 = vld [vmem:[%s1011_s2 + $0x8] sm:$0xff]  ;;  %v771_v14 = vmov 0   ;;  %v301_v16 = vld [vmem:[%s1011_s2 + $0x10] sm:$0xff] }
  0x14   : > { %s618_s14 = sshll.u32 %s1024_s13, 3  ;;  %704 = vset.pattern.permute.xlu0 %v771_v14  ;;  %705 = vset.pattern.permute.xlu1 %v771_v14  ;;  %v299_v17 = vld [vmem:[%s1011_s2] sm:$0xff]  ;;  %v430_v20 = vld [vmem:[%s1013_s4 + $0x8] sm:$0xff]  ;;  %v297_v25 = vld [vmem:[%s1010_s1 + $0x10] sm:$0xff]  ;;  %s616_s13 = sshll.u32 %s270_s9, 3 }
  0x15   : > { %s864_s17 = scalar_lea.vmem %s1009_s0, %s618_s14  ;;  %320 = vperm.xlu0 %704, %v302_v11   ;;  %310 = vperm.xlu1 %705, %v300_v12   ;;  %v429_v21 = vld [vmem:[%s1013_s4] sm:$0xff]  ;;  %v296_v23 = vld [vmem:[%s1010_s1 + $0x8] sm:$0xff]  ;;  %v298_v26 = vld [vmem:[%s1010_s1 + $0x18] sm:$0xff]  ;;  %s645_s14 = sshll.u32 %s833_s28, 3 }
  0x16   : > { %v294_v0 = vld [vmem:[%s864_s17 + $0x78] sm:$0xff]  ;;  %v293_v1 = vld [vmem:[%s864_s17 + $0x70] sm:$0xff]  ;;  %v292_v2 = vld [vmem:[%s864_s17 + $0x68] sm:$0xff]  ;;  %706 = vset.pattern.permute.xlu2 %v771_v14  ;;  %s548_s18 = scalar_lea.hbm %s1016_s7, %s645_s14  ;;  %s272_s19 = scalar_lea.vmem [#allocation2], %s616_s13 }
  0x17   : > { %648 = vmatpush.xpose.msk.msra.mxu3 %vm323_vm0, %v294_v0  ;;  %619 = vmatpush.xpose.msk.msra.mxu0 %vm323_vm0, %v294_v0  ;;  %v291_v3 = vld [vmem:[%s864_s17 + $0x60] sm:$0xff]  ;;  %v290_v4 = vld [vmem:[%s864_s17 + $0x58] sm:$0xff]  ;;  %v289_v5 = vld [vmem:[%s864_s17 + $0x50] sm:$0xff]  ;;  %s550_s20 = sshll.u32 %s272_s19, 4  ;;  %s552_s21 = sshll.u32 %s548_s18, 4  ;;  %s551_s20 = int_to_ptr.vmem [resolvable:$true] %s550_s20  ;;  %s553_s21 = int_to_ptr.hbm [resolvable:$true] %s552_s21 }
  0x18   : > { %v288_v6 = vld [vmem:[%s864_s17 + $0x48] sm:$0xff]  ;;  %v287_v7 = vld [vmem:[%s864_s17 + $0x40] sm:$0xff]  ;;  %v286_v8 = vld [vmem:[%s864_s17 + $0x38] sm:$0xff]  ;;  %s721_s22 = sshra.s32 %s553_s21, 4  ;;  %s722_s22 = int_to_ptr.hbm [resolvable:$true] %s721_s22 }
  0x19   : > { %v285_v9 = vld [vmem:[%s864_s17 + $0x30] sm:$0xff]  ;;  %v284_v10 = vld [vmem:[%s864_s17 + $0x28] sm:$0xff]  ;;  %v283_v13 = vld [vmem:[%s864_s17 + $0x20] sm:$0xff]  ;;  %s723_s23 = scalar_lea.hbm %s722_s22, 8  ;;  %p728_p0 = scmp.lt.s32.totalorder %s722_s22, %s1016_s7 }
  0x1a   : > { %v282_v15 = vld [vmem:[%s864_s17 + $0x18] sm:$0xff]  ;;  %v281_v18 = vld [vmem:[%s864_s17 + $0x10] sm:$0xff]  ;;  %v280_v19 = vld [vmem:[%s864_s17 + $0x8] sm:$0xff]  ;;  %p724_p11 = scmp.ne.s32.totalorder %s722_s22, %s723_s23  ;;  %p729_p1 = scmp.lt.s32.totalorder %s727_s8, %s723_s23 }
  0x1b   : > { %649 = vmatpush.xpose.msk.msra.mxu3 %vm323_vm0, %v293_v1  ;;  %620 = vmatpush.xpose.msk.msra.mxu0 %vm323_vm0, %v293_v1  ;;  %v279_v22 = vld [vmem:[%s864_s17] sm:$0xff]  ;;  %v432_v43 = vld [vmem:[%s1013_s4 + $0x18] sm:$0xff]  ;;  %v431_v49 = vld [vmem:[%s1013_s4 + $0x10] sm:$0xff]  ;;  %s538_s17 = scalar_lea.sflag [#allocation3], %s270_s9 }
  0x1c   : > { %v295_v24 = vld [vmem:[%s1010_s1] sm:$0xff]  ;;  %450 = vperm.xlu2 %706, %v432_v43   ;;  %v426_v50 = vld [vmem:[%s1012_s3 + $0x8] sm:$0xff]  ;;  %v427_v52 = vld [vmem:[%s1012_s3 + $0x10] sm:$0xff]  ;;  %p725_p12 = pnand %p724_p11, %p850_p5  ;;  %p730_p2 = por %p729_p1, %p728_p0 }
  0x1d   : > { %315 = vperm.xlu0 %704, %v301_v16   ;;  %305 = vperm.xlu1 %705, %v299_v17   ;;  %v425_v47 = vld [vmem:[%s1012_s3] sm:$0xff]  ;;  %v428_v53 = vld [vmem:[%s1012_s3 + $0x18] sm:$0xff] }
  0x1e   : > { %v507_v51 = vld [vmem:[%s1015_s6] sm:$0xff]  ;;  %p726_p13 = pneg %p725_p12 }
  0x1f   : > { %650 = vmatpush.xpose.msk.msra.mxu3 %vm323_vm0, %v292_v2  ;;  %621 = vmatpush.xpose.msk.msra.mxu0 %vm323_vm0, %v292_v2 }
  0x20   : > { %p731_p3 = pnand %p730_p2, %p726_p13 }
  0x23   : > { %651 = vmatpush.xpose.msk.msra.mxu3 %vm323_vm0, %v291_v3  ;;  %622 = vmatpush.xpose.msk.msra.mxu0 %vm323_vm0, %v291_v3 }
  0x24   : > { %445 = vperm.xlu2 %706, %v431_v49  }
  0x25   : > { %440 = vperm.xlu0 %704, %v430_v20   ;;  %435 = vperm.xlu1 %705, %v429_v21  }
  0x27   : > { %652 = vmatpush.xpose.msk.msra.mxu3 %vm323_vm0, %v290_v4  ;;  %623 = vmatpush.xpose.msk.msra.mxu0 %vm323_vm0, %v290_v4 }
  0x2b   : > { %653 = vmatpush.xpose.msk.msra.mxu3 %vm323_vm0, %v289_v5  ;;  %624 = vmatpush.xpose.msk.msra.mxu0 %vm323_vm0, %v289_v5 }
  0x2c   : > { %510 = vperm.xlu2 %706, %v507_v51  }
  0x2f   : > { %654 = vmatpush.xpose.msk.msra.mxu3 %vm323_vm0, %v288_v6  ;;  %625 = vmatpush.xpose.msk.msra.mxu0 %vm323_vm0, %v288_v6 }
  0x33   : > { %655 = vmatpush.xpose.msk.msra.mxu3 %vm323_vm0, %v287_v7  ;;  %626 = vmatpush.xpose.msk.msra.mxu0 %vm323_vm0, %v287_v7 }
  0x37   : > { %656 = vmatpush.xpose.msk.msra.mxu3 %vm323_vm0, %v286_v8  ;;  %627 = vmatpush.xpose.msk.msra.mxu0 %vm323_vm0, %v286_v8 }
  0x3b   : > { %657 = vmatpush.xpose.msk.msra.mxu3 %vm323_vm0, %v285_v9  ;;  %628 = vmatpush.xpose.msk.msra.mxu0 %vm323_vm0, %v285_v9  ;;  %v506_v9 = vld [vmem:[%s1014_s5] sm:$0xff] }
  0x3f   : > { %658 = vmatpush.xpose.msk.msra.mxu3 %vm323_vm0, %v284_v10  ;;  %629 = vmatpush.xpose.msk.msra.mxu0 %vm323_vm0, %v284_v10 }
  0x43   : > { %659 = vmatpush.xpose.msk.msra.mxu3 %vm323_vm0, %v283_v13  ;;  %630 = vmatpush.xpose.msk.msra.mxu0 %vm323_vm0, %v283_v13 }
  0x47   : > { %660 = vmatpush.xpose.msk.msra.mxu3 %vm323_vm0, %v282_v15  ;;  %631 = vmatpush.xpose.msk.msra.mxu0 %vm323_vm0, %v282_v15 }
  0x4b   : > { %661 = vmatpush.xpose.msk.msra.mxu3 %vm323_vm0, %v281_v18  ;;  %632 = vmatpush.xpose.msk.msra.mxu0 %vm323_vm0, %v281_v18 }
  0x4f   : > { %662 = vmatpush.xpose.msk.msra.mxu3 %vm323_vm0, %v280_v19  ;;  %633 = vmatpush.xpose.msk.msra.mxu0 %vm323_vm0, %v280_v19 }
  0x53   : > { %663 = vmatpush.xpose.msk.msra.mxu3 %vm323_vm0, %v279_v22  ;;  %634 = vmatpush.xpose.msk.msra.mxu0 %vm323_vm0, %v279_v22 }
  0x56   : > { %636 = vmatmul.msk.f32.vlgmr.msra.gmra.mxu3 %vm323_vm0, %v296_v23  ;;  %635 = vmatmul.msk.f32.vlgmr.msra.gmra.mxu0 %vm323_vm0, %v295_v24 }
  0x5e   : > { %637 = vmatmul.msk.f32.gmra.mxu3 %vm323_vm0, %v297_v25 }
  0x66   : > { %638 = vmatmul.msk.f32.gmra.mxu3 %vm323_vm0, %v298_v26 }
  0x76   : > { %v451_v56 = vpop.permute.xlu2 %450 }
  0x7e   : > { %v446_v58 = vpop.permute.xlu2 %445 }
  0x86   : > { %v511_v11 = vpop.permute.xlu2 %510 }
  0x87   : > { %v321_v28 = vpop.permute.xlu0 %320  ;;  %v311_v29 = vpop.permute.xlu1 %310 }
  0x8f   : > { %v316_v31 = vpop.permute.xlu0 %315  ;;  %v306_v37 = vpop.permute.xlu1 %305 }
  0x97   : > { %v441_v60 = vpop.permute.xlu0 %440  ;;  %v436_v0 = vpop.permute.xlu1 %435 }
  0xd3   : > { %v401_v33 = vpop.f32.mrf.mxu0 }
  0xd4   : > { %v402_v38 = vadd.f32 %v401_v33, %v306_v37 }
  0xd6   : > { %v417_v45 = vmul.f32 0.01, %v402_v38  ;;  %vm413_vm4 = vcmp.gt.f32.partialorder %v402_v38, 0.0 }
  0xd8   : > { %v421_v48 = vsel %vm413_vm4, %v402_v38, %v417_v45 }
  0xd9   : > { %v404_v27 = vpop.f32.mrf.mxu3 }
  0xda   : > { %v405_v35 = vadd.f32 %v404_v27, %v311_v29 }
  0xdc   : > { %v418_v42 = vmul.f32 0.01, %v405_v35  ;;  %vm414_vm3 = vcmp.gt.f32.partialorder %v405_v35, 0.0 }
  0xde   : > { %v422_v46 = vsel %vm414_vm3, %v405_v35, %v418_v42 }
  0xe1   : > { %v407_v30 = vpop.f32.mrf.mxu3 }
  0xe2   : > { %v408_v32 = vadd.f32 %v407_v30, %v316_v31 }
  0xe4   : > { %v419_v40 = vmul.f32 0.01, %v408_v32  ;;  %vm415_vm2 = vcmp.gt.f32.partialorder %v408_v32, 0.0 }
  0xe6   : > { %v423_v44 = vsel %vm415_vm2, %v408_v32, %v419_v40 }
  0xe9   : > { %v410_v34 = vpop.f32.mrf.mxu3 }
  0xea   : > { %v411_v36 = vadd.f32 %v410_v34, %v321_v28 }
  0xec   : > { %vm416_vm1 = vcmp.gt.f32.partialorder %v411_v36, 0.0  ;;  %v420_v39 = vmul.f32 0.01, %v411_v36 }
  0xee   : > { %v424_v41 = vsel %vm416_vm1, %v411_v36, %v420_v39 }
  0xef   : > { %477 = vmatpush.msra.mxu1 %v424_v41 }
  0xf1   : > { %478 = vmatpush.msra.mxu1 %v423_v44 }
  0xf3   : > { %479 = vmatpush.msra.mxu1 %v422_v46 }
  0xf5   : > { %480 = vmatpush.msra.mxu1 %v421_v48 }
  0xf6   : > { %639 = vmatmul.msk.f32.vlgmr.msra.gmra.mxu1 %vm323_vm0, %v425_v47 }
  0xfe   : > { %640 = vmatmul.msk.f32.gmra.mxu1 %vm323_vm0, %v426_v50 }
 0x106   : > { %641 = vmatmul.msk.f32.gmra.mxu1 %vm323_vm0, %v427_v52 }
 0x10e   : > { %642 = vmatmul.msk.f32.gmra.mxu1 %vm323_vm0, %v428_v53 }
 0x173   : > { %v482_v54 = vpop.f32.mrf.mxu1 }
 0x174   : > { %v483_v1 = vadd.f32 %v482_v54, %v436_v0 }
 0x176   : > { %v498_v7 = vmul.f32 0.01, %v483_v1  ;;  %vm494_vm8 = vcmp.gt.f32.partialorder %v483_v1, 0.0 }
 0x178   : > { %v502_v10 = vsel %vm494_vm8, %v483_v1, %v498_v7 }
 0x17b   : > { %v485_v55 = vpop.f32.mrf.mxu1 }
 0x17c   : > { %v486_v62 = vadd.f32 %v485_v55, %v441_v60 }
 0x17e   : > { %v499_v5 = vmul.f32 0.01, %v486_v62  ;;  %vm495_vm7 = vcmp.gt.f32.partialorder %v486_v62, 0.0 }
 0x180   : > { %v503_v8 = vsel %vm495_vm7, %v486_v62, %v499_v5 }
 0x183   : > { %v488_v57 = vpop.f32.mrf.mxu1 }
 0x184   : > { %v489_v59 = vadd.f32 %v488_v57, %v446_v58 }
 0x186   : > { %v500_v3 = vmul.f32 0.01, %v489_v59  ;;  %vm496_vm6 = vcmp.gt.f32.partialorder %v489_v59, 0.0 }
 0x188   : > { %v504_v6 = vsel %vm496_vm6, %v489_v59, %v500_v3 }
 0x18b   : > { %v491_v61 = vpop.f32.mrf.mxu1 }
 0x18c   : > { %v492_v63 = vadd.f32 %v491_v61, %v451_v56 }
 0x18e   : > { %vm497_vm5 = vcmp.gt.f32.partialorder %v492_v63, 0.0  ;;  %v501_v2 = vmul.f32 0.01, %v492_v63 }
 0x190   : > { %v505_v4 = vsel %vm497_vm5, %v492_v63, %v501_v2 }
 0x191   : > { %528 = vmatpush.msra.mxu2 %v505_v4 }
 0x193   : > { %529 = vmatpush.msra.mxu2 %v504_v6 }
 0x195   : > { %530 = vmatpush.msra.mxu2 %v503_v8 }
 0x197   : > { %531 = vmatpush.msra.mxu2 %v502_v10 }
 0x198   : > { %643 = vmatmul.msk.f32.vlgmr.msra.gmra.mxu2 %vm323_vm0, %v506_v9 }
 0x21b   : > { %v533_v12 = vpop.f32.mrf.mxu2 }
 0x21c   : > { %v534_v13 = vadd.f32 %v533_v12, %v511_v11 }
 0x21e   : > { %536 = vst [vmem:[%s272_s19] sm:$0xff] %v534_v13 }
 0x21f   : > { %734 = shalt.err (!%p731_p3)
}
 0x220   : > { %664 = dma.vmem_to_hbm [thread:$0]  (%p850_p5), %s551_s20, 128, %s553_s21, %s538_s17  }
 0x221 PF: > { %p670_p4 = scmp.ge.s32.totalorder %s769_s27, 2  ;;  %s564_s9 = sand.u32 1, %s757_s24  }
 0x222   : > { %s565_s15 = scalar_lea.sflag [#allocation3], %s564_s9 }
 0x223   : > { %p667_p7 = pnand %p670_p4, %p854_p6 }
 0x225   : > { %p668_p8 = pneg %p667_p7 }
 0x227   : > { %752 = dma.done.wait (%p668_p8), %s565_s15, 128  }
 0x228   : > { %754 = vsyncadd (%p668_p8), %s565_s15, 4294967168  ;;  %p17_p9 = scmp.ge.s32.totalorder %s837_s30, 4   ;;  %s1019_s24 = smov %s761_s25 }
 0x229   : > { %s1020_s25 = smov %s765_s26  ;;  %s1021_s26 = smov %s848_s10 }
 0x22a   : > { %s1022_s27 = smov %s837_s30  ;;  %19 = sbr.rel (!%p17_p9) target bundleno = 3 (0x3), region = 83 }
 0x22f   :  { %571 = vsyncpa [#allocation3], 1 }
 0x230   :  { %573 = vsyncpa [#allocation3 + $0x1], 1 }

</bundles_post_ra>
